<compile_context>
chip_gen: v6e
topology: v6e:2x2x1
jax: 0.10.0
libtpu: 0.0.40
codegen_flags: <defaults>
</compile_context>

<pallas_src>
import math
import numpy as np
import jax
import jax.numpy as jnp
from jax.experimental import pallas as pl
from jax.experimental.pallas import tpu as pltpu

# ---- model hyper-params (small, consistent with the module) ----
BATCH = 2
SEQ = 8
D_MODEL = 32
D_FF = 64
HEADS = 4
HEAD_DIM = D_MODEL // HEADS        # 8
LN_EPS = 1e-5

# One (D, D) block-diagonal head mask serves three roles below (score projection,
# per-head softmax denominator, context projection); that works because
# SEQ == HEAD_DIM here.  For general SEQ the three masks would have shapes
# (H*Hd, H*S), (H*S, H*S) and (H*S, H*Hd).
assert SEQ == HEAD_DIM

# ---- packed-slab layout (lane offsets inside the two parameter slabs) ----
QKV_COLS = 3 * D_MODEL             # 96  fused q|k|v output columns
QKV_PAD = 128                      # padded to one full 128-lane tile
WO_OFF = QKV_PAD                   # 128
W1_OFF = WO_OFF + D_MODEL          # 160
W2_OFF = W1_OFF + D_FF             # 224
W_COLS = W2_OFF + D_MODEL          # 256
W_ROWS = D_FF                      # 64  (w2 needs 64 rows; spare rows hold the mask)
VEC_ROWS, VEC_COLS = 8, 128


def encoder_block_kernel(x_ref, w_ref, vec_ref, o_ref):
    x = x_ref[0].astype(jnp.float32)                          # (S, D)

    # --- static slices of the two packed parameter slabs (no extra DMAs) ---
    w_qkv = w_ref[0:D_MODEL, 0:QKV_PAD]                       # (32, 128)  Q cols pre-scaled
    w_o = w_ref[0:D_MODEL, WO_OFF:WO_OFF + D_MODEL]           # (32, 32)
    w_1 = w_ref[0:D_MODEL, W1_OFF:W1_OFF + D_FF]              # (32, 64)
    w_2 = w_ref[0:D_FF, W2_OFF:W2_OFF + D_MODEL]              # (64, 32)
    hmask = w_ref[D_MODEL:2 * D_MODEL, 0:D_MODEL]             # (32, 32) block-diag head mask

    vecs = vec_ref[...]                                       # (8, 128) single load
    b_qkv = vecs[0:1, :]                                      # (1, 128)
    b_o = vecs[1:2, 0:D_MODEL]
    b_1 = vecs[2:3, 0:D_FF]
    b_2 = vecs[3:4, 0:D_MODEL]
    g1 = vecs[4:5, 0:D_MODEL]
    be1 = vecs[5:6, 0:D_MODEL]
    g2 = vecs[6:7, 0:D_MODEL]
    be2 = vecs[7:8, 0:D_MODEL]

    # --- fused QKV projection (1/sqrt(head_dim) folded into the Q columns) ---
    qkv = jnp.dot(x, w_qkv, preferred_element_type=jnp.float32) + b_qkv    # (S, 128)
    q = qkv[:, 0:D_MODEL]                                     # (S, 32)
    k = qkv[:, D_MODEL:2 * D_MODEL]                           # (S, 32)
    v = qkv[:, 2 * D_MODEL:3 * D_MODEL]                       # (S, 32)
    # Lanes 96:128 of qkv are exactly zero (wqkv / bqkv padding) and are never read.

    # --- all-head attention via block-diagonal operands (no per-head relayouts) ---
    # K_blk[h*Hd + d, h*S + j] = k[j, h*Hd + d], so
    # (q @ K_blk)[i, h*S + j] = sum_d q[i, h*Hd+d] * k[j, h*Hd+d]  (per-head scores,
    # already scaled since the Q weights carry 1/sqrt(head_dim)).
    k_blk = hmask * jnp.concatenate([k.T] * HEADS, axis=1)               # (32, 32)
    s = jnp.dot(q, k_blk, preferred_element_type=jnp.float32)            # (S, H*S)
    # TODO(synk): optional attention mask would be added to `s` here (mask=None only).
    s = s - jnp.max(s, axis=-1, keepdims=True)   # per-row constant -> softmax-invariant
    p = jnp.exp(s)
    denom = jnp.dot(p, hmask, preferred_element_type=jnp.float32)        # per-head row sums
    p = p / denom                                                        # exact reciprocal
    # V_blk[h*S + j, h*Hd + d] = v[j, h*Hd + d] -> context lands directly in (S, D)
    # with head h occupying features h*Hd:(h+1)*Hd (same layout as the reference).
    v_blk = hmask * jnp.concatenate([v] * HEADS, axis=0)                 # (32, 32)
    ctx = jnp.dot(p, v_blk, preferred_element_type=jnp.float32)          # (S, D)

    attn = jnp.dot(ctx, w_o, preferred_element_type=jnp.float32) + b_o   # (S, D)

    def layer_norm(h, g, b):
        mu = jnp.mean(h, axis=-1, keepdims=True)
        var = jnp.mean(jnp.square(h - mu), axis=-1, keepdims=True)
        return (h - mu) * jax.lax.rsqrt(var + LN_EPS) * g + b

    # ---- residual + LayerNorm (dropout_sa == identity at inference) ----
    h1 = layer_norm(attn + x, g1, be1)

    # ---- FFN: Linear -> ReLU -> Linear ----
    f = jnp.maximum(jnp.dot(h1, w_1, preferred_element_type=jnp.float32) + b_1, 0.0)
    f = jnp.dot(f, w_2, preferred_element_type=jnp.float32) + b_2

    # ---- residual + LayerNorm (dropout_ffn == identity at inference) ----
    h2 = layer_norm(f + h1, g2, be2)

    o_ref[0] = h2.astype(o_ref.dtype)


def pack_params(p):
    """One-time host-side transform of module params into two packed slabs."""
    scale = 1.0 / math.sqrt(HEAD_DIM)

    w = np.zeros((W_ROWS, W_COLS), np.float32)
    w[0:D_MODEL, 0:D_MODEL] = np.asarray(p["wq"]) * scale            # Q (pre-scaled)
    w[0:D_MODEL, D_MODEL:2 * D_MODEL] = np.asarray(p["wk"])          # K
    w[0:D_MODEL, 2 * D_MODEL:3 * D_MODEL] = np.asarray(p["wv"])      # V
    w[0:D_MODEL, WO_OFF:WO_OFF + D_MODEL] = np.asarray(p["wo"])
    w[0:D_MODEL, W1_OFF:W1_OFF + D_FF] = np.asarray(p["w1"])
    w[0:D_FF, W2_OFF:W2_OFF + D_MODEL] = np.asarray(p["w2"])
    # Constant block-diagonal head mask (8x8 blocks on the diagonal).
    w[D_MODEL:2 * D_MODEL, 0:D_MODEL] = np.kron(
        np.eye(HEADS, dtype=np.float32),
        np.ones((HEAD_DIM, HEAD_DIM), np.float32))

    vec = np.zeros((VEC_ROWS, VEC_COLS), np.float32)
    vec[0, 0:D_MODEL] = np.asarray(p["bq"])[0] * scale               # Q bias (pre-scaled)
    vec[0, D_MODEL:2 * D_MODEL] = np.asarray(p["bk"])[0]
    vec[0, 2 * D_MODEL:3 * D_MODEL] = np.asarray(p["bv"])[0]
    vec[1, 0:D_MODEL] = np.asarray(p["bo"])[0]
    vec[2, 0:D_FF] = np.asarray(p["b1"])[0]
    vec[3, 0:D_MODEL] = np.asarray(p["b2"])[0]
    vec[4, 0:D_MODEL] = np.asarray(p["g1"])[0]
    vec[5, 0:D_MODEL] = np.asarray(p["be1"])[0]
    vec[6, 0:D_MODEL] = np.asarray(p["g2"])[0]
    vec[7, 0:D_MODEL] = np.asarray(p["be2"])[0]

    return {"w_slab": jnp.asarray(w), "vec_slab": jnp.asarray(vec)}


def transformer_encoder_block(x, kparams, mask=None):
    assert mask is None  # TODO(synk): optional attention-mask path not implemented
    B, S, D = x.shape
    w_slab = kparams["w_slab"]
    vec_slab = kparams["vec_slab"]

    out = pl.pallas_call(
        encoder_block_kernel,
        out_shape=jax.ShapeDtypeStruct((B, S, D), x.dtype),
        grid=(B,),
        in_specs=[
            pl.BlockSpec((1, S, D), lambda b: (b, 0, 0)),
            pl.BlockSpec(w_slab.shape, lambda b: (0, 0)),     # resident across steps
            pl.BlockSpec(vec_slab.shape, lambda b: (0, 0)),   # resident across steps
        ],
        out_specs=pl.BlockSpec((1, S, D), lambda b: (b, 0, 0)),
        compiler_params=pltpu.CompilerParams(
            dimension_semantics=("parallel",)),               # v7x: one batch per TC
    )(x, w_slab, vec_slab)
    return out


def reference_block(x, p):
    # Pure-JAX reference for sanity checking (unfused params, explicit score scale).
    B, S, D = x.shape
    q = x @ p["wq"] + p["bq"]
    k = x @ p["wk"] + p["bk"]
    v = x @ p["wv"] + p["bv"]
    qh = q.reshape(B, S, HEADS, HEAD_DIM).transpose(0, 2, 1, 3)
    kh = k.reshape(B, S, HEADS, HEAD_DIM).transpose(0, 2, 1, 3)
    vh = v.reshape(B, S, HEADS, HEAD_DIM).transpose(0, 2, 1, 3)
    s = jnp.einsum("bhqd,bhkd->bhqk", qh, kh) / math.sqrt(HEAD_DIM)
    pmat = jax.nn.softmax(s, axis=-1)
    ctx = jnp.einsum("bhqk,bhkd->bhqd", pmat, vh).transpose(0, 2, 1, 3).reshape(B, S, D)
    attn = ctx @ p["wo"] + p["bo"]

    def ln(h, g, b):
        mu = jnp.mean(h, axis=-1, keepdims=True)
        var = jnp.mean((h - mu) ** 2, axis=-1, keepdims=True)
        return (h - mu) * jax.lax.rsqrt(var + LN_EPS) * g + b

    h1 = ln(attn + x, p["g1"], p["be1"])
    f = jnp.maximum(h1 @ p["w1"] + p["b1"], 0.0) @ p["w2"] + p["b2"]
    return ln(f + h1, p["g2"], p["be2"])


def init_params(key):
    ks = jax.random.split(key, 8)
    scale_d = 1.0 / math.sqrt(D_MODEL)
    scale_f = 1.0 / math.sqrt(D_FF)
    return {
        "wq": jax.random.normal(ks[0], (D_MODEL, D_MODEL), jnp.float32) * scale_d,
        "bq": jnp.zeros((1, D_MODEL), jnp.float32),
        "wk": jax.random.normal(ks[1], (D_MODEL, D_MODEL), jnp.float32) * scale_d,
        "bk": jnp.zeros((1, D_MODEL), jnp.float32),
        "wv": jax.random.normal(ks[2], (D_MODEL, D_MODEL), jnp.float32) * scale_d,
        "bv": jnp.zeros((1, D_MODEL), jnp.float32),
        "wo": jax.random.normal(ks[3], (D_MODEL, D_MODEL), jnp.float32) * scale_d,
        "bo": jax.random.normal(ks[4], (1, D_MODEL), jnp.float32) * 0.01,
        "w1": jax.random.normal(ks[5], (D_MODEL, D_FF), jnp.float32) * scale_d,
        "b1": jnp.full((1, D_FF), 0.01, jnp.float32),
        "w2": jax.random.normal(ks[6], (D_FF, D_MODEL), jnp.float32) * scale_f,
        "b2": jnp.full((1, D_MODEL), -0.01, jnp.float32),
        "g1": jnp.ones((1, D_MODEL), jnp.float32),
        "be1": jnp.zeros((1, D_MODEL), jnp.float32),
        "g2": jnp.ones((1, D_MODEL), jnp.float32),
        "be2": jnp.zeros((1, D_MODEL), jnp.float32),
    }


if __name__ == "__main__":
    key = jax.random.PRNGKey(0)
    kx, kp = jax.random.split(key)
    x = jax.random.normal(kx, (BATCH, SEQ, D_MODEL), jnp.float32)
    params = init_params(kp)
    kparams = pack_params(params)   # one-time packed / pre-scaled slab layout

    out = jax.block_until_ready(transformer_encoder_block(x, kparams))
    ref = jax.block_until_ready(reference_block(x, params))

    # Softmax now uses an exact reciprocal; the remaining (small) mismatch comes from
    # default TPU matmul precision / summation-order differences between the XLA
    # reference and the fused kernel (scale folded into Q, block-diagonal operands).
    np.testing.assert_allclose(np.asarray(out), np.asarray(ref), rtol=5e-3, atol=5e-3)

    print("KERNEL_OK")
</pallas_src>

<mosaic_0001>
module attributes {stable_mosaic.version = 11 : i64} {
  func.func @encoder_block_kernel(%arg0: i32, %arg1: memref<1x8x32xf32, #tpu.memory_space<vmem>>, %arg2: memref<64x256xf32, #tpu.memory_space<vmem>>, %arg3: memref<8x128xf32, #tpu.memory_space<vmem>>, %arg4: memref<1x8x32xf32, #tpu.memory_space<vmem>>) attributes {dimension_semantics = [#tpu.dimension_semantics<parallel>], iteration_bounds = array<i64: 2>, scalar_prefetch = 0 : i64, scratch_operands = 0 : i64, tpu.core_type = #tpu.core_type<tc>, window_params = [{transform_indices = @transform_0, window_bounds = array<i64: 1, 8, 32>}, {pipeline_mode = #tpu.pipeline_mode<synchronous>, transform_indices = @transform_1, window_bounds = array<i64: 64, 256>}, {pipeline_mode = #tpu.pipeline_mode<synchronous>, transform_indices = @transform_2, window_bounds = array<i64: 8, 128>}, {transform_indices = @transform_3, window_bounds = array<i64: 1, 8, 32>}]} {
    %c0 = arith.constant 0 : index
    %c0_0 = arith.constant 0 : index
    %c0_1 = arith.constant 0 : index
    %0 = vector.load %arg1[%c0, %c0_0, %c0_1] : memref<1x8x32xf32, #tpu.memory_space<vmem>>, vector<1x8x32xf32>
    %1 = vector.shape_cast %0 : vector<1x8x32xf32> to vector<8x32xf32>
    %c0_2 = arith.constant 0 : index
    %c0_3 = arith.constant 0 : index
    %2 = vector.load %arg2[%c0_2, %c0_3] : memref<64x256xf32, #tpu.memory_space<vmem>>, vector<32x128xf32>
    %c0_4 = arith.constant 0 : index
    %c128 = arith.constant 128 : index
    %3 = vector.load %arg2[%c0_4, %c128] : memref<64x256xf32, #tpu.memory_space<vmem>>, vector<32x32xf32>
    %c0_5 = arith.constant 0 : index
    %c160 = arith.constant 160 : index
    %4 = vector.load %arg2[%c0_5, %c160] : memref<64x256xf32, #tpu.memory_space<vmem>>, vector<32x64xf32>
    %c0_6 = arith.constant 0 : index
    %c224 = arith.constant 224 : index
    %5 = vector.load %arg2[%c0_6, %c224] : memref<64x256xf32, #tpu.memory_space<vmem>>, vector<64x32xf32>
    %c32 = arith.constant 32 : index
    %c0_7 = arith.constant 0 : index
    %6 = vector.load %arg2[%c32, %c0_7] : memref<64x256xf32, #tpu.memory_space<vmem>>, vector<32x32xf32>
    %c0_8 = arith.constant 0 : index
    %c0_9 = arith.constant 0 : index
    %7 = vector.load %arg3[%c0_8, %c0_9] : memref<8x128xf32, #tpu.memory_space<vmem>>, vector<8x128xf32>
    %8 = vector.extract_strided_slice %7 {offsets = [0, 0], sizes = [1, 128], strides = [1, 1]} : vector<8x128xf32> to vector<1x128xf32>
    %9 = vector.extract_strided_slice %7 {offsets = [1, 0], sizes = [1, 32], strides = [1, 1]} : vector<8x128xf32> to vector<1x32xf32>
    %10 = vector.extract_strided_slice %7 {offsets = [2, 0], sizes = [1, 64], strides = [1, 1]} : vector<8x128xf32> to vector<1x64xf32>
    %11 = vector.extract_strided_slice %7 {offsets = [3, 0], sizes = [1, 32], strides = [1, 1]} : vector<8x128xf32> to vector<1x32xf32>
    %12 = vector.extract_strided_slice %7 {offsets = [4, 0], sizes = [1, 32], strides = [1, 1]} : vector<8x128xf32> to vector<1x32xf32>
    %13 = vector.extract_strided_slice %7 {offsets = [5, 0], sizes = [1, 32], strides = [1, 1]} : vector<8x128xf32> to vector<1x32xf32>
    %14 = vector.extract_strided_slice %7 {offsets = [6, 0], sizes = [1, 32], strides = [1, 1]} : vector<8x128xf32> to vector<1x32xf32>
    %15 = vector.extract_strided_slice %7 {offsets = [7, 0], sizes = [1, 32], strides = [1, 1]} : vector<8x128xf32> to vector<1x32xf32>
    %cst = arith.constant dense<0.000000e+00> : vector<8x128xf32>
    %16 = tpu.matmul %1, %2, %cst {dimension_numbers = #tpu.dot_dimension_numbers<[1], [0], [0], [1], [0, 0, 1, 1], [], []>} : vector<8x32xf32>, vector<32x128xf32>, vector<8x128xf32> -> vector<8x128xf32>
    %17 = vector.broadcast %8 : vector<1x128xf32> to vector<8x128xf32>
    %18 = arith.addf %16, %17 : vector<8x128xf32>
    %19 = vector.extract_strided_slice %18 {offsets = [0, 0], sizes = [8, 32], strides = [1, 1]} : vector<8x128xf32> to vector<8x32xf32>
    %20 = vector.extract_strided_slice %18 {offsets = [0, 32], sizes = [8, 32], strides = [1, 1]} : vector<8x128xf32> to vector<8x32xf32>
    %21 = vector.extract_strided_slice %18 {offsets = [0, 64], sizes = [8, 32], strides = [1, 1]} : vector<8x128xf32> to vector<8x32xf32>
    %22 = tpu.transpose %20, [1, 0] : vector<8x32xf32> -> vector<32x8xf32>
    %23 = tpu.concatenate %22, %22, %22, %22 in 1 : vector<32x8xf32>, vector<32x8xf32>, vector<32x8xf32>, vector<32x8xf32> -> vector<32x32xf32>
    %24 = arith.mulf %6, %23 : vector<32x32xf32>
    %cst_10 = arith.constant dense<0.000000e+00> : vector<8x32xf32>
    %25 = tpu.matmul %19, %24, %cst_10 {dimension_numbers = #tpu.dot_dimension_numbers<[1], [0], [0], [1], [0, 0, 1, 1], [], []>} : vector<8x32xf32>, vector<32x32xf32>, vector<8x32xf32> -> vector<8x32xf32>
    %cst_11 = arith.constant dense<0xFF800000> : vector<8xf32>
    %26 = vector.multi_reduction <maximumf>, %25, %cst_11 [1] : vector<8x32xf32> to vector<8xf32>
    %27 = vector.shape_cast %26 : vector<8xf32> to vector<8x1xf32>
    %28 = vector.broadcast %27 : vector<8x1xf32> to vector<8x32xf32>
    %29 = arith.subf %25, %28 : vector<8x32xf32>
    %30 = math.exp %29 : vector<8x32xf32>
    %cst_12 = arith.constant dense<0.000000e+00> : vector<8x32xf32>
    %31 = tpu.matmul %30, %6, %cst_12 {dimension_numbers = #tpu.dot_dimension_numbers<[1], [0], [0], [1], [0, 0, 1, 1], [], []>} : vector<8x32xf32>, vector<32x32xf32>, vector<8x32xf32> -> vector<8x32xf32>
    %32 = arith.divf %30, %31 : vector<8x32xf32>
    %33 = tpu.concatenate %21, %21, %21, %21 in 0 : vector<8x32xf32>, vector<8x32xf32>, vector<8x32xf32>, vector<8x32xf32> -> vector<32x32xf32>
    %34 = arith.mulf %6, %33 : vector<32x32xf32>
    %cst_13 = arith.constant dense<0.000000e+00> : vector<8x32xf32>
    %35 = tpu.matmul %32, %34, %cst_13 {dimension_numbers = #tpu.dot_dimension_numbers<[1], [0], [0], [1], [0, 0, 1, 1], [], []>} : vector<8x32xf32>, vector<32x32xf32>, vector<8x32xf32> -> vector<8x32xf32>
    %cst_14 = arith.constant dense<0.000000e+00> : vector<8x32xf32>
    %36 = tpu.matmul %35, %3, %cst_14 {dimension_numbers = #tpu.dot_dimension_numbers<[1], [0], [0], [1], [0, 0, 1, 1], [], []>} : vector<8x32xf32>, vector<32x32xf32>, vector<8x32xf32> -> vector<8x32xf32>
    %37 = vector.broadcast %9 : vector<1x32xf32> to vector<8x32xf32>
    %38 = arith.addf %36, %37 : vector<8x32xf32>
    %39 = arith.addf %38, %1 : vector<8x32xf32>
    %cst_15 = arith.constant dense<0.000000e+00> : vector<8xf32>
    %40 = vector.multi_reduction <add>, %39, %cst_15 [1] : vector<8x32xf32> to vector<8xf32>
    %41 = vector.shape_cast %40 : vector<8xf32> to vector<8x1xf32>
    %cst_16 = arith.constant 3.200000e+01 : f32
    %42 = vector.broadcast %cst_16 : f32 to vector<8x1xf32>
    %43 = arith.divf %41, %42 : vector<8x1xf32>
    %44 = vector.broadcast %43 : vector<8x1xf32> to vector<8x32xf32>
    %45 = arith.subf %39, %44 : vector<8x32xf32>
    %46 = arith.mulf %45, %45 : vector<8x32xf32>
    %cst_17 = arith.constant dense<0.000000e+00> : vector<8xf32>
    %47 = vector.multi_reduction <add>, %46, %cst_17 [1] : vector<8x32xf32> to vector<8xf32>
    %48 = vector.shape_cast %47 : vector<8xf32> to vector<8x1xf32>
    %cst_18 = arith.constant 3.200000e+01 : f32
    %49 = vector.broadcast %cst_18 : f32 to vector<8x1xf32>
    %50 = arith.divf %48, %49 : vector<8x1xf32>
    %51 = vector.broadcast %43 : vector<8x1xf32> to vector<8x32xf32>
    %52 = arith.subf %39, %51 : vector<8x32xf32>
    %cst_19 = arith.constant 9.99999974E-6 : f32
    %53 = vector.broadcast %cst_19 : f32 to vector<8x1xf32>
    %54 = arith.addf %50, %53 : vector<8x1xf32>
    %55 = math.rsqrt %54 : vector<8x1xf32>
    %56 = vector.broadcast %55 : vector<8x1xf32> to vector<8x32xf32>
    %57 = arith.mulf %52, %56 : vector<8x32xf32>
    %58 = vector.broadcast %12 : vector<1x32xf32> to vector<8x32xf32>
    %59 = arith.mulf %57, %58 : vector<8x32xf32>
    %60 = vector.broadcast %13 : vector<1x32xf32> to vector<8x32xf32>
    %61 = arith.addf %59, %60 : vector<8x32xf32>
    %cst_20 = arith.constant dense<0.000000e+00> : vector<8x64xf32>
    %62 = tpu.matmul %61, %4, %cst_20 {dimension_numbers = #tpu.dot_dimension_numbers<[1], [0], [0], [1], [0, 0, 1, 1], [], []>} : vector<8x32xf32>, vector<32x64xf32>, vector<8x64xf32> -> vector<8x64xf32>
    %63 = vector.broadcast %10 : vector<1x64xf32> to vector<8x64xf32>
    %64 = arith.addf %62, %63 : vector<8x64xf32>
    %cst_21 = arith.constant 0.000000e+00 : f32
    %65 = vector.broadcast %cst_21 : f32 to vector<8x64xf32>
    %66 = arith.maximumf %64, %65 : vector<8x64xf32>
    %cst_22 = arith.constant dense<0.000000e+00> : vector<8x32xf32>
    %67 = tpu.matmul %66, %5, %cst_22 {dimension_numbers = #tpu.dot_dimension_numbers<[1], [0], [0], [1], [0, 0, 1, 1], [], []>} : vector<8x64xf32>, vector<64x32xf32>, vector<8x32xf32> -> vector<8x32xf32>
    %68 = vector.broadcast %11 : vector<1x32xf32> to vector<8x32xf32>
    %69 = arith.addf %67, %68 : vector<8x32xf32>
    %70 = arith.addf %69, %61 : vector<8x32xf32>
    %cst_23 = arith.constant dense<0.000000e+00> : vector<8xf32>
    %71 = vector.multi_reduction <add>, %70, %cst_23 [1] : vector<8x32xf32> to vector<8xf32>
    %72 = vector.shape_cast %71 : vector<8xf32> to vector<8x1xf32>
    %cst_24 = arith.constant 3.200000e+01 : f32
    %73 = vector.broadcast %cst_24 : f32 to vector<8x1xf32>
    %74 = arith.divf %72, %73 : vector<8x1xf32>
    %75 = vector.broadcast %74 : vector<8x1xf32> to vector<8x32xf32>
    %76 = arith.subf %70, %75 : vector<8x32xf32>
    %77 = arith.mulf %76, %76 : vector<8x32xf32>
    %cst_25 = arith.constant dense<0.000000e+00> : vector<8xf32>
    %78 = vector.multi_reduction <add>, %77, %cst_25 [1] : vector<8x32xf32> to vector<8xf32>
    %79 = vector.shape_cast %78 : vector<8xf32> to vector<8x1xf32>
    %cst_26 = arith.constant 3.200000e+01 : f32
    %80 = vector.broadcast %cst_26 : f32 to vector<8x1xf32>
    %81 = arith.divf %79, %80 : vector<8x1xf32>
    %82 = vector.broadcast %74 : vector<8x1xf32> to vector<8x32xf32>
    %83 = arith.subf %70, %82 : vector<8x32xf32>
    %cst_27 = arith.constant 9.99999974E-6 : f32
    %84 = vector.broadcast %cst_27 : f32 to vector<8x1xf32>
    %85 = arith.addf %81, %84 : vector<8x1xf32>
    %86 = math.rsqrt %85 : vector<8x1xf32>
    %87 = vector.broadcast %86 : vector<8x1xf32> to vector<8x32xf32>
    %88 = arith.mulf %83, %87 : vector<8x32xf32>
    %89 = vector.broadcast %14 : vector<1x32xf32> to vector<8x32xf32>
    %90 = arith.mulf %88, %89 : vector<8x32xf32>
    %91 = vector.broadcast %15 : vector<1x32xf32> to vector<8x32xf32>
    %92 = arith.addf %90, %91 : vector<8x32xf32>
    %c0_28 = arith.constant 0 : index
    %c0_29 = arith.constant 0 : index
    %c0_30 = arith.constant 0 : index
    %93 = vector.load %arg4[%c0_28, %c0_29, %c0_30] : memref<1x8x32xf32, #tpu.memory_space<vmem>>, vector<1x8x32xf32>
    %94 = vector.shape_cast %93 : vector<1x8x32xf32> to vector<8x32xf32>
    %95 = vector.shape_cast %92 : vector<8x32xf32> to vector<1x8x32xf32>
    tpu.vector_store %arg4[%c0_28, %c0_29, %c0_30], %95 {strides = array<i32>} : memref<1x8x32xf32, #tpu.memory_space<vmem>>, vector<1x8x32xf32>,
    return
  }
  func.func @transform_0(%arg0: i32) -> (i32, i32, i32) {
    %c0_i32 = arith.constant 0 : i32
    %c0_i32_0 = arith.constant 0 : i32
    %c0_i32_1 = arith.constant 0 : i32
    return %arg0, %c0_i32, %c0_i32_0 : i32, i32, i32
  }
  func.func @transform_1(%arg0: i32) -> (i32, i32) {
    %c0_i32 = arith.constant 0 : i32
    %c0_i32_0 = arith.constant 0 : i32
    %c0_i32_1 = arith.constant 0 : i32
    return %c0_i32, %c0_i32_0 : i32, i32
  }
  func.func @transform_2(%arg0: i32) -> (i32, i32) {
    %c0_i32 = arith.constant 0 : i32
    %c0_i32_0 = arith.constant 0 : i32
    %c0_i32_1 = arith.constant 0 : i32
    return %c0_i32, %c0_i32_0 : i32, i32
  }
  func.func @transform_3(%arg0: i32) -> (i32, i32, i32) {
    %c0_i32 = arith.constant 0 : i32
    %c0_i32_0 = arith.constant 0 : i32
    %c0_i32_1 = arith.constant 0 : i32
    return %arg0, %c0_i32, %c0_i32_0 : i32, i32, i32
  }
}

</mosaic_0001>

<bundles_post_ra>
// kernel: tpu_custom_call.1
= control target key start
LH: loop header
LB: loop body
LE: loop exit
PB: predicated region body
PF: predicated region fallthrough
CT: control target
= control target key end

     0   :  { %8 = vsyncpa [#allocation3], 0  ;;  %s1784_s0 = inlined_call_operand.hbm [shape: f32[2,8,32], index: 0, kind: input, shape index: {}]   ;;  %s1785_s1 = inlined_call_operand.hbm [shape: f32[64,256], index: 1, kind: input, shape index: {}]   ;;  %s1786_s2 = inlined_call_operand.hbm [shape: f32[8,128], index: 2, kind: input, shape index: {}]   ;;  %s1787_s3 = inlined_call_operand.hbm [shape: f32[2,8,32], index: 3, kind: output, shape index: {}]  }
   0x1   :  { %10 = vsyncpa [#allocation3 + $0x1], 0 }
   0x2   :  { %11 = vsyncpa [#allocation6], 0 }
   0x3   :  { %12 = vsyncpa [#allocation4], 0 }
   0x4   :  { %14 = vsyncpa [#allocation4 + $0x1], 0  ;;  %s1491_s12 = smov 0   ;;  %s1493_s13 = smov 0  }
   0x5   :  { %s1495_s14 = smov 0   ;;  %s1497_s15 = smov 0  }
   0x6 LB: > { %s1512_s16 = sadd.s32 4294967295, %s1455_s15   ;;  %s1075_s17 = sadd.s32 4294967294, %s1455_s15   ;;  %s1455_s15 = sphi %s1497_s15, %s1809_s15   ;;  %s1451_s14 = sphi %s1495_s14, %s1808_s14   ;;  %s1447_s13 = sphi %s1493_s13, %s1807_s13   ;;  %s1443_s12 = sphi %s1491_s12, %s1806_s12  }
   0x7   : > { %p40_p0 = scmp.ne.s32.totalorder %s1447_s13, %s1443_s12  ;;  %p1788_p1 = scmp.eq.s32.totalorder %s1512_s16, 0 }
   0x8   : > { %p112_p3 = scmp.eq.s32.totalorder %s1075_s17, 1  ;;  %p1076_p5 = scmp.ge.s32.totalorder %s1455_s15, 1 }
   0x9   : > { %p1521_p4 = por %p1788_p1, %p40_p0  ;;  %p119_p7 = scmp.lt.s32.totalorder %s1455_s15, 3 }
   0xa   : > { %p1526_p6 = por %p112_p3, %p40_p0  ;;  %s1457_s21 = smov [#allocation5]  }
   0xb   : > { %s1792_s18 = scalar_select %p1521_p4, 1, 0 }
   0xc   : > { %s1793_s19 = scalar_select %p1526_p6, 1, 0 }
   0xd   : > { %p1531_p8 = pnand %p1076_p5, %p119_p7  ;;  %s131_s22 = sshll.u32 %s1457_s21, 4  ;;  %s132_s22 = int_to_ptr.vmem [resolvable:$true] %s131_s22 }
   0xe   : > { %s1458_s24 = smov [#allocation7]   ;;  %s1318_s26 = scalar_lea.vmem %s132_s22, 2048 }
   0xf   : > { %s1794_s20 = scalar_select %p1531_p8, 1, 0 }
  0x10   : > { %p1234_p9 = pneg %p1531_p8  ;;  %s145_s25 = sshll.u32 %s1458_s24, 4  ;;  %s146_s25 = int_to_ptr.vmem [resolvable:$true] %s145_s25 }
  0x11   : > { %p1319_p13 = scmp.ne.s32.totalorder %s132_s22, %s1318_s26  ;;  %p1326_p5 = scmp.lt.s32.totalorder %s132_s22, %s132_s22 }
  0x12   : > { %p1540_p11 = pnand %p1234_p9, %p1788_p1  ;;  %p1327_p7 = scmp.lt.s32.totalorder %s1318_s26, %s1318_s26 }
  0x14   : > { %p1309_p12 = pneg %p1540_p11  ;;  %p1328_p10 = por %p1327_p7, %p1326_p5 }
  0x16   : > { %p1321_p0 = pnand %p1319_p13, %p1309_p12 }
  0x18   : > { %p1322_p3 = pneg %p1321_p0 }
  0x1a   : > { %p1329_p9 = pnand %p1328_p10, %p1322_p3 }
  0x1c   : > { %1332 = shalt.err (!%p1329_p9)
}
  0x1d   : > { %s1459_s27 = smov 256   ;;  %s1460_s28 = smov 16  }
  0x1e   : > { %1237 = dma.hbm_to_vmem [thread:$0]  (!%p1540_p11), %s1785_s1, 2048, %s132_s22, [#allocation6], %s1459_s27, %s1459_s27, %s1460_s28  }
  0x1f   : > { %s1344_s4 = scalar_lea.vmem %s146_s25, 128  ;;  %p1352_p2 = scmp.lt.s32.totalorder %s146_s25, %s146_s25 }
  0x20   : > { %p1345_p1 = scmp.ne.s32.totalorder %s146_s25, %s1344_s4  ;;  %p1353_p6 = scmp.lt.s32.totalorder %s1344_s4, %s1344_s4 }
  0x22   : > { %p1347_p13 = pnand %p1345_p1, %p1309_p12  ;;  %p1354_p5 = por %p1353_p6, %p1352_p2 }
  0x24   : > { %p1348_p0 = pneg %p1347_p13 }
  0x26   : > { %p1355_p10 = pnand %p1354_p5, %p1348_p0 }
  0x28   : > { %1358 = shalt.err (!%p1355_p10)
}
  0x29   : > { %1240 = dma.hbm_to_vmem [thread:$0]  (!%p1540_p11), %s1786_s2, 128, %s146_s25, [#allocation6]  }
  0x2a   : > { %s1563_s7 = sadd.s32 1, %s1455_s15   ;;  %s27_s8 = sadd.s32 1, %s1451_s14 }
  0x2b   : > { %s24_s9 = ssub.s32 %s1455_s15, %s1563_s7  ;;  %p34_p1 = scmp.ne.s32.totalorder %s1451_s14, %s1447_s13 }
  0x2c   : > { %p25_p2 = scmp.eq.s32.totalorder %s24_s9, 0  ;;  %p35_p6 = scmp.eq.s32.totalorder %s1455_s15, 0 }
  0x2d   : > { %p1796_p12 = scmp.eq.s32.totalorder %s1512_s16, 1  ;;  %p1251_p7 = scmp.lt.s32.totalorder %s1455_s15, 2 }
  0x2e   : > { %s1579_s11 = scalar_select %p25_p2, %s1451_s14, %s27_s8  }
  0x2f   : > { %p1573_p3 = por %p1796_p12, %p34_p1  ;;  %p36_p9 = por %p35_p6, %p34_p1 }
  0x30   : > { %s156_s17 = sand.u32 1, %s1451_s14   ;;  %s1081_s22 = sshll.u32 %s1455_s15, 7 }
  0x31   : > { %s1797_s10 = scalar_select %p1573_p3, 1, 0 }
  0x32   : > { %s1080_s21 = sshll.u32 %s156_s17, 3  ;;  %s1586_s25 = scalar_lea.hbm %s1784_s0, %s1081_s22 }
  0x33   : > { %s160_s26 = scalar_lea.vmem [#allocation2], %s1080_s21  ;;  %p1588_p11 = pnand %p1251_p7, %p36_p9 }
  0x34   : > { %s167_s27 = sshll.u32 %s160_s26, 4  ;;  %s157_s29 = scalar_lea.sflag [#allocation3], %s156_s17  ;;  %s168_s27 = int_to_ptr.vmem [resolvable:$true] %s167_s27 }
  0x35   : > { %s1359_s30 = scalar_lea.hbm %s1586_s25, 128  ;;  %p1361_p0 = pneg %p1588_p11 }
  0x36   : > { %p1360_p13 = scmp.ne.s32.totalorder %s1586_s25, %s1359_s30  ;;  %s1364_s6 = scalar_lea.hbm %s1784_s0, 256 }
  0x37   : > { %p1365_p1 = scmp.lt.s32.totalorder %s1586_s25, %s1784_s0  ;;  %p1366_p2 = scmp.lt.s32.totalorder %s1364_s6, %s1359_s30 }
  0x38   : > { %p1362_p5 = pnand %p1361_p0, %p1360_p13 }
  0x39   : > { %p1367_p6 = por %p1366_p2, %p1365_p1 }
  0x3a   : > { %p1363_p10 = pneg %p1362_p5 }
  0x3c   : > { %p1368_p12 = pnand %p1367_p6, %p1363_p10 }
  0x3e   : > { %1371 = shalt.err (!%p1368_p12)
}
  0x3f   : > { %s1372_s21 = scalar_lea.vmem %s168_s27, 128  ;;  %s1461_s17 = smov [#allocation2]  }
  0x40   : > { %p1373_p7 = scmp.ne.s32.totalorder %s168_s27, %s1372_s21  ;;  %s1377_s22 = sshll.u32 %s1461_s17, 4  ;;  %s1378_s22 = int_to_ptr.vmem [resolvable:$false] %s1377_s22 }
  0x41   : > { %s1379_s23 = scalar_lea.vmem %s1378_s22, 256  ;;  %p1380_p13 = scmp.lt.s32.totalorder %s168_s27, %s1378_s22 }
  0x42   : > { %p1375_p9 = pnand %p1373_p7, %p1361_p0  ;;  %p1381_p5 = scmp.lt.s32.totalorder %s1379_s23, %s1372_s21 }
  0x44   : > { %p1376_p3 = pneg %p1375_p9  ;;  %p1382_p4 = por %p1381_p5, %p1380_p13 }
  0x46   : > { %p1383_p8 = pnand %p1382_p4, %p1376_p3 }
  0x48   : > { %1386 = shalt.err (!%p1383_p8)
}
  0x49   : > { %1244 = dma.hbm_to_vmem [thread:$0]  (!%p1588_p11), %s1586_s25, 128, %s168_s27, %s157_s29  }
  0x4a   : > { %p1799_p10 = scmp.ne.s32.totalorder %s1794_s20, 0 }
  0x4b   : > { %s1609_s24 = sand.u32 (!%p1799_p10), 1, %s1447_s13   ;;  %p1800_p4 = scmp.ne.s32.totalorder (!%p1799_p10), %s1792_s18, 0 }
  0x4c   : > { %176 = sbr.rel (%p1799_p10) target bundleno = 2661 (0xa65), region = 32  ;;  %s1083_s26 = sshll.u32 (!%p1799_p10), %s1609_s24, 3 }
  0x4d   : > { %s179_s30 = scalar_lea.sflag (!%p1799_p10), [#allocation3], %s1609_s24  ;;  %s182_s4 = scalar_lea.vmem (!%p1799_p10), [#allocation2], %s1083_s26 }
  0x51   : > { %1430 = dma.done.wait (%p1800_p4), %s179_s30, 128  }
  0x52   : > { %1432 = vsyncadd (%p1800_p4), %s179_s30, 4294967168  ;;  %p1801_p8 = scmp.eq.s32.totalorder %s1512_s16, 0 }
  0x54   : > { %1434 = dma.done.wait (%p1801_p8), [#allocation6], 2176   ;;  %p1802_p3 = pmov %p1801_p8 }
  0x55   : > { %v1462_v0 = vmov 0.0   ;;  %vm1463_vm0 = vmmov 0   ;;  %v217_v1 = vld [vmem:[#allocation5 + $0x30] sm:$0xff]  ;;  %v216_v2 = vld [vmem:[#allocation5 + $0x20] sm:$0xff]  ;;  %vm239_vm1 = vcmask 261120   ;;  %v235_v6 = vlaneseq  ;;  %s1464_s18 = smov 96  }
  0x56   : > { %1436 = vsyncadd (%p1802_p3), [#allocation6], 4294965120  ;;  %1137 = vmatprep.subr.mxu1 %v1462_v0  ;;  %1145 = vmatprep.mubr.msk.f32.mxu1 %vm1463_vm0, %v1462_v0  ;;  %v215_v3 = vld [vmem:[#allocation5 + $0x10] sm:$0xff]  ;;  %v214_v4 = vld [vmem:[#allocation5] sm:$0xff]  ;;  %s1465_s20 = smov 8   ;;  %s1466_s25 = smov 24  }
  0x57   : > { %1159 = vmatprep.subr.mxu0 %v1462_v0  ;;  %1167 = vmatprep.mubr.msk.f32.mxu0 %vm1463_vm0, %v1462_v0  ;;  %v1631_v5 = vld [vmem:[%s182_s4] sm:$0xff]  ;;  %v1639_v7 = vshrl.u32 %v235_v6, 7  ;;  %v1642_v9 = vld [vmem:[#allocation7] sm:$0xff]  ;;  %s1467_s27 = smov 16   ;;  %vm394_vm2 = vcmask 130048   ;;  %vm389_vm3 = vcmask 64512  }
  0x58   : > { %1138 = vmatpush3.msra.mxu1 %v217_v1  ;;  %v1649_v18 = vld [vmem:[#allocation5 + $0x70] sm:$0xff]  ;;  %v1652_v19 = vld [vmem:[#allocation5 + $0x60] sm:$0xff]  ;;  %vm399_vm4 = vcmask 195584   ;;  %s1468_s28 = smov 64   ;;  %v221_v63 = vld [vmem:[#allocation5 + $0x38] sm:$0xff]  ;;  %s1469_s29 = smov 32  }
  0x59   : > { %1139 = vmatprep.subr.mxu1 %v1462_v0  ;;  %v237_v8 = vsub.s32 0, %v1639_v7  ;;  %1160 = vmatpush3.msra.mxu0 %v1649_v18  ;;  %v1656_v20 = vld [vmem:[#allocation5 + $0x50] sm:$0xff]  ;;  %v1661_v22 = vld [vmem:[#allocation5 + $0x40] sm:$0xff]  ;;  %v220_v1 = vld [vmem:[#allocation5 + $0x28] sm:$0xff]  ;;  %vm873_vm5 = vcmask 523264   ;;  %s1095_s5 = sshll.u32 %s1512_s16, 7 }
  0x5a   : > { %1140 = vmatpush3.msra.mxu1 %v216_v2  ;;  %1161 = vmatprep.subr.mxu0 %v1462_v0  ;;  %v219_v2 = vld [vmem:[#allocation5 + $0x18] sm:$0xff]  ;;  %s212_s6 = scalar_lea.vmem [#allocation8], %s1083_s26  ;;  %s984_s17 = scalar_lea.hbm %s1787_s3, %s1095_s5 }
  0x5b   : > { %1141 = vmatprep.subr.mxu1 %v1462_v0  ;;  %v238_v10 = vrot.slane %v1642_v9, %v237_v8  ;;  %1162 = vmatpush3.msra.mxu0 %v1652_v19  ;;  %s986_s8 = sshll.u32 %s212_s6, 4  ;;  %s973_s22 = scalar_lea.sflag [#allocation4], %s1609_s24  ;;  %s987_s8 = int_to_ptr.vmem [resolvable:$true] %s986_s8 }
  0x5c   : > { %1142 = vmatpush3.msra.mxu1 %v215_v3  ;;  %1163 = vmatprep.subr.mxu0 %v1462_v0  ;;  %s1387_s23 = scalar_lea.vmem %s987_s8, 128  ;;  %p1803_p0 = scmp.ne.s32.totalorder %s1797_s10, 0 }
  0x5d   : > { %1143 = vmatprep.subr.mxu1 %v1462_v0  ;;  %1164 = vmatpush3.msra.mxu0 %v1656_v20  ;;  %p1388_p11 = scmp.ne.s32.totalorder %s987_s8, %s1387_s23  ;;  %s1470_s30 = smov [#allocation8]  }
  0x5e   : > { %1144 = vmatpush3.msra.mxu1 %v214_v4  ;;  %1165 = vmatprep.subr.mxu0 %v1462_v0  ;;  %s1391_s16 = sshll.u32 %s1470_s30, 4  ;;  %s1392_s16 = int_to_ptr.vmem [resolvable:$false] %s1391_s16 }
  0x5f   : > { %1146 = vmatmul.mubr.msk.f32.vlgmr.msra.gmra.mxu1 %vm239_vm1, %v1631_v5  ;;  %1148 = vmatprep.subr.mxu1 %v1462_v0  ;;  %p1389_p1 = pnand %p1388_p11, %p1803_p0  ;;  %s1393_s26 = scalar_lea.vmem %s1392_s16, 256 }
  0x60   : > { %1156 = vmatprep.mubr.msk.f32.mxu1 %vm1463_vm0, %v1462_v0  ;;  %1166 = vmatpush3.msra.mxu0 %v1661_v22  ;;  %p1394_p6 = scmp.lt.s32.totalorder %s987_s8, %s1392_s16  ;;  %p1395_p12 = scmp.lt.s32.totalorder %s1393_s26, %s1387_s23 }
  0x61   : > { %1181 = vmatprep.subr.mxu0 %v1462_v0  ;;  %p1390_p2 = pneg %p1389_p1 }
  0x62   : > { %p1396_p7 = por %p1395_p12, %p1394_p6 }
  0x64   : > { %p1397_p9 = pnand %p1396_p7, %p1390_p2 }
 0x11f   : > { %v309_v11 = vpop.f32.mrf.mxu1 }
 0x120   : > { %v1645_v12 = vadd.f32 %v309_v11, %v238_v10  ;;  %v218_v10 = vld [vmem:[#allocation5 + $0x8] sm:$0xff] }
 0x121   : > { %v1147_v13 = vpop.f32.mrf.mxu1 }
 0x122   : > { %314 = vrot.lane.b32.xlu0 %v1645_v12, %s1464_s18  ;;  %v643_v13 = vsub.s32 1, %v1639_v7 }
 0x194   : > { %v315_v14 = vpop.permute.xlu0 %314 }
 0x195   : > { %317 = vxpose.xlu0.b32.start.end [1/1] (short) (narrow) %v315_v14, 32  ;;  %v644_v14 = vrot.slane %v1642_v9, %v643_v13 }
 0x211   : > { %v333_v15 = vpop.trf.xlu0 }
 0x212   : > { %353 = vrot.lane.b32.xlu1 %v333_v15, %s1465_s20 }
 0x215   : > { %v334_v16 = vpop.trf.xlu0 }
 0x216   : > { %379 = vrot.lane.b32.xlu0 %v334_v16, %s1466_s25  ;;  %355 = vrot.lane.b32.xlu1 %v334_v16, %s1465_s20 }
 0x219   : > { %v335_v17 = vpop.trf.xlu0 }
 0x21a   : > { %367 = vrot.lane.b32.xlu1 %v334_v16, %s1467_s27 }
 0x21d   : > { %v336_v21 = vpop.trf.xlu0 }
 0x21e   : > { %357 = vrot.lane.b32.xlu1 %v335_v17, %s1465_s20 }
 0x222   : > { %369 = vrot.lane.b32.xlu1 %v335_v17, %s1467_s27 }
 0x226   : > { %381 = vrot.lane.b32.xlu1 %v335_v17, %s1466_s25 }
 0x22a   : > { %359 = vrot.lane.b32.xlu1 %v336_v21, %s1465_s20 }
 0x22e   : > { %371 = vrot.lane.b32.xlu1 %v336_v21, %s1467_s27 }
 0x232   : > { %383 = vrot.lane.b32.xlu1 %v336_v21, %s1466_s25 }
 0x236   : > { %365 = vrot.lane.b32.xlu1 %v333_v15, %s1467_s27 }
 0x23a   : > { %377 = vrot.lane.b32.xlu1 %v333_v15, %s1466_s25 }
 0x284   : > { %v354_v23 = vpop.permute.xlu1 %353 }
 0x285   : > { %v390_v46 = vsel %vm389_vm3, %v333_v15, %v354_v23 }
 0x288   : > { %v356_v24 = vpop.permute.xlu1 %355  ;;  %v380_v40 = vpop.permute.xlu0 %379 }
 0x289   : > { %v391_v31 = vsel %vm389_vm3, %v334_v16, %v356_v24 }
 0x28c   : > { %v368_v25 = vpop.permute.xlu1 %367 }
 0x28d   : > { %v396_v34 = vsel %vm394_vm2, %v391_v31, %v368_v25 }
 0x28e   : > { %v401_v42 = vsel %vm399_vm4, %v396_v34, %v380_v40 }
 0x28f   : > { %v405_v45 = vmul.f32 %v401_v42, %v1656_v20 }
 0x290   : > { %v358_v26 = vpop.permute.xlu1 %357 }
 0x291   : > { %v392_v32 = vsel %vm389_vm3, %v335_v17, %v358_v26  ;;  %v228_v26 = vld [vmem:[#allocation5 + $0x68] sm:$0xff] }
 0x294   : > { %v370_v27 = vpop.permute.xlu1 %369 }
 0x295   : > { %v397_v35 = vsel %vm394_vm2, %v392_v32, %v370_v27  ;;  %v227_v27 = vld [vmem:[#allocation5 + $0x58] sm:$0xff] }
 0x298   : > { %v382_v28 = vpop.permute.xlu1 %381 }
 0x299   : > { %v402_v38 = vsel %vm399_vm4, %v397_v35, %v382_v28  ;;  %v226_v28 = vld [vmem:[#allocation5 + $0x48] sm:$0xff] }
 0x29a   : > { %v406_v43 = vmul.f32 %v402_v38, %v1652_v19  ;;  %v740_v38 = vsub.s32 5, %v1639_v7 }
 0x29c   : > { %v360_v29 = vpop.permute.xlu1 %359 }
 0x29d   : > { %v393_v33 = vsel %vm389_vm3, %v336_v21, %v360_v29 }
 0x2a0   : > { %v372_v30 = vpop.permute.xlu1 %371 }
 0x2a1   : > { %v398_v36 = vsel %vm394_vm2, %v393_v33, %v372_v30 }
 0x2a4   : > { %v384_v37 = vpop.permute.xlu1 %383 }
 0x2a5   : > { %v403_v39 = vsel %vm399_vm4, %v398_v36, %v384_v37  ;;  %v735_v37 = vsub.s32 4, %v1639_v7 }
 0x2a6   : > { %v407_v41 = vmul.f32 %v403_v39, %v1649_v18 }
 0x2a8   : > { %1149 = vmatpush3.msra.mxu1 %v407_v41  ;;  %v366_v44 = vpop.permute.xlu1 %365  ;;  %v736_v41 = vrot.slane %v1642_v9, %v735_v37 }
 0x2a9   : > { %1150 = vmatprep.subr.mxu1 %v1462_v0  ;;  %v395_v47 = vsel %vm394_vm2, %v390_v46, %v366_v44  ;;  %v741_v44 = vrot.slane %v1642_v9, %v740_v38 }
 0x2aa   : > { %1151 = vmatpush3.msra.mxu1 %v406_v43 }
 0x2ab   : > { %1152 = vmatprep.subr.mxu1 %v1462_v0 }
 0x2ac   : > { %v378_v48 = vpop.permute.xlu1 %377  ;;  %1153 = vmatpush3.msra.mxu1 %v405_v45 }
 0x2ad   : > { %v400_v49 = vsel %vm399_vm4, %v395_v47, %v378_v48  ;;  %1154 = vmatprep.subr.mxu1 %v1462_v0 }
 0x2ae   : > { %v404_v50 = vmul.f32 %v400_v49, %v1661_v22 }
 0x2b0   : > { %1155 = vmatpush3.msra.mxu1 %v404_v50 }
 0x2b1   : > { %1157 = vmatmul.mubr.msk.f32.vlgmr.msra.gmra.mxu1 %vm239_vm1, %v1645_v12  ;;  %1170 = vmatprep.subr.mxu1 %v1462_v0 }
 0x2b2   : > { %1178 = vmatprep.mubr.msk.f32.mxu1 %vm1463_vm0, %v1462_v0 }
 0x371   : > { %v476_v51 = vpop.f32.mrf.mxu1 }
 0x372   : > { %v480_v52 = vsel %vm239_vm1, %v476_v51, -inf }
 0x373   : > { %481 = vmax.xlane.f32.xlu1 %v480_v52  ;;  %v1158_v53 = vpop.f32.mrf.mxu1 }
 0x384   : > { %561 = vrot.lane.b32.xlu1 %v1645_v12, %s1468_s28 }
 0x3fc   : > { %v482_v54 = vpop.xlane.xlu1 %481 }
 0x3fd   : > { %v483_v55 = vsub.f32 %v476_v51, %v482_v54  ;;  %v745_v51 = vsub.s32 2, %v1639_v7 }
 0x3ff   : > { %v484_v56 = vmul.f32 1.442695, %v483_v55  ;;  %v746_v52 = vrot.slane %v1642_v9, %v745_v51 }
 0x400   : > { %v562_v57 = vpop.permute.xlu1 %561 }
 0x401   : > { %1299 = vpow2.f32 %v484_v56  ;;  %v567_v58 = vmul.f32 %v562_v57, %v1649_v18  ;;  %v566_v59 = vmul.f32 %v562_v57, %v1652_v19  ;;  %v565_v60 = vmul.f32 %v562_v57, %v1656_v20 }
 0x402   : > { %v564_v61 = vmul.f32 %v562_v57, %v1661_v22  ;;  %v839_v57 = vsub.s32 3, %v1639_v7 }
 0x403   : > { %1171 = vmatpush3.msra.mxu1 %v567_v58 }
 0x404   : > { %1172 = vmatprep.subr.mxu1 %v1462_v0  ;;  %v840_v58 = vrot.slane %v1642_v9, %v839_v57 }
 0x405   : > { %1173 = vmatpush3.msra.mxu1 %v566_v59 }
 0x406   : > { %1174 = vmatprep.subr.mxu1 %v1462_v0 }
 0x407   : > { %1175 = vmatpush3.msra.mxu1 %v565_v60 }
 0x408   : > { %1176 = vmatprep.subr.mxu1 %v1462_v0 }
 0x409   : > { %1177 = vmatpush3.msra.mxu1 %v564_v61 }
 0x40a   : > { %1192 = vmatprep.subr.mxu1 %v1462_v0 }
 0x40e   : > { %v1300_v62 = vpop.eup %1299 }
 0x40f   : > { %1168 = vmatmul.mubr.msk.f32.vlgmr.msra.gmra.mxu0 %vm239_vm1, %v1300_v62 }
 0x410   : > { %1189 = vmatprep.mubr.msk.f32.mxu0 %vm1463_vm0, %v1462_v0  ;;  %1182 = vmatpush3.msra.mxu0 %v221_v63 }
 0x411   : > { %1183 = vmatprep.subr.mxu0 %v1462_v0 }
 0x412   : > { %1184 = vmatpush3.msra.mxu0 %v220_v1 }
 0x413   : > { %1185 = vmatprep.subr.mxu0 %v1462_v0 }
 0x414   : > { %1186 = vmatpush3.msra.mxu0 %v219_v2 }
 0x415   : > { %1187 = vmatprep.subr.mxu0 %v1462_v0 }
 0x416   : > { %1188 = vmatpush3.msra.mxu0 %v218_v10 }
 0x417   : > { %1203 = vmatprep.subr.mxu0 %v1462_v0 }
 0x4cf   : > { %v555_v3 = vpop.f32.mrf.mxu0 }
 0x4d0   : > { %1301 = vrcp.f32 %v555_v3 }
 0x4d1   : > { %v1169_v4 = vpop.f32.mrf.mxu0 }
 0x4dd   : > { %v1302_v6 = vpop.eup %1301 }
 0x4de   : > { %v560_v8 = vmul.f32 %v1302_v6, %v1300_v62 }
 0x4e0   : > { %1179 = vmatmul.mubr.msk.f32.vlgmr.msra.gmra.mxu1 %vm239_vm1, %v560_v8 }
 0x4e1   : > { %1200 = vmatprep.mubr.msk.f32.mxu1 %vm1463_vm0, %v1462_v0 }
 0x5a0   : > { %v637_v11 = vpop.f32.mrf.mxu1 }
 0x5a1   : > { %1190 = vmatmul.mubr.msk.f32.vlgmr.msra.gmra.mxu0 %vm239_vm1, %v637_v11  ;;  %v963_v11 = vsub.s32 6, %v1639_v7 }
 0x5a2   : > { %v1180_v12 = vpop.f32.mrf.mxu1  ;;  %1219 = vmatprep.mubr.msk.f32.mxu0 %vm1463_vm0, %v1462_v0 }
 0x5a3   : > { %v968_v12 = vsub.s32 7, %v1639_v7  ;;  %v964_v13 = vrot.slane %v1642_v9, %v963_v11 }
 0x661   : > { %v714_v15 = vpop.f32.mrf.mxu0 }
 0x662   : > { %v715_v16 = vadd.f32 %v714_v15, %v644_v14 }
 0x663   : > { %v1191_v17 = vpop.f32.mrf.mxu0 }
 0x664   : > { %v718_v18 = vadd.f32 %v715_v16, %v1631_v5  ;;  %v229_v5 = vld [vmem:[#allocation5 + $0x78] sm:$0xff]  ;;  %v969_v16 = vrot.slane %v1642_v9, %v968_v12 }
 0x666   : > { %v719_v19 = vsel %vm239_vm1, %v718_v18, 0.0 }
 0x667   : > { %720 = vadd.xlane.f32.xlu0 %v719_v19 }
 0x67d   : > { %757 = vrot.lane.b32.xlu0 %v221_v63, %s1464_s18 }
 0x681   : > { %753 = vrot.lane.b32.xlu0 %v219_v2, %s1464_s18 }
 0x685   : > { %751 = vrot.lane.b32.xlu0 %v218_v10, %s1464_s18 }
 0x689   : > { %863 = vrot.lane.b32.xlu0 %v229_v5, %s1469_s29 }
 0x68d   : > { %859 = vrot.lane.b32.xlu0 %v227_v27, %s1469_s29 }
 0x691   : > { %855 = vrot.lane.b32.xlu0 %v221_v63, %s1469_s29 }
 0x695   : > { %851 = vrot.lane.b32.xlu0 %v219_v2, %s1469_s29 }
 0x6f0   : > { %v721_v20 = vpop.xlane.xlu0 %720 }
 0x6f1   : > { %v723_v21 = vmul.f32 0.03125, %v721_v20 }
 0x6f3   : > { %v724_v22 = vsub.f32 %v718_v18, %v723_v21 }
 0x6f4   : > { %v758_v25 = vpop.permute.xlu0 %757 }
 0x6f5   : > { %v725_v23 = vmul.f32 %v724_v22, %v724_v22  ;;  %1193 = vmatpush3.msra.mxu1 %v758_v25 }
 0x6f6   : > { %1194 = vmatprep.subr.mxu1 %v1462_v0 }
 0x6f7   : > { %v726_v24 = vsel %vm239_vm1, %v725_v23, 0.0 }
 0x6f8   : > { %727 = vadd.xlane.f32.xlu1 %v726_v24  ;;  %v754_v30 = vpop.permute.xlu0 %753 }
 0x6fc   : > { %v752_v34 = vpop.permute.xlu0 %751 }
 0x700   : > { %v864_v35 = vpop.permute.xlu0 %863 }
 0x701   : > { %1204 = vmatpush3.msra.mxu0 %v864_v35 }
 0x702   : > { %1205 = vmatprep.subr.mxu0 %v1462_v0 }
 0x704   : > { %v860_v39 = vpop.permute.xlu0 %859 }
 0x708   : > { %v856_v45 = vpop.permute.xlu0 %855 }
 0x709   : > { %755 = vrot.lane.b32.xlu1 %v220_v1, %s1464_s18 }
 0x70c   : > { %v852_v49 = vpop.permute.xlu0 %851 }
 0x70d   : > { %861 = vrot.lane.b32.xlu1 %v228_v26, %s1469_s29 }
 0x711   : > { %857 = vrot.lane.b32.xlu1 %v226_v28, %s1469_s29 }
 0x715   : > { %853 = vrot.lane.b32.xlu1 %v220_v1, %s1469_s29 }
 0x719   : > { %849 = vrot.lane.b32.xlu1 %v218_v10, %s1469_s29 }
 0x781   : > { %v728_v29 = vpop.xlane.xlu1 %727 }
 0x782   : > { %v729_v31 = vmul.f32 0.03125, %v728_v29 }
 0x784   : > { %v730_v32 = vadd.f32 1e-05, %v729_v31 }
 0x785   : > { %v756_v33 = vpop.permute.xlu1 %755 }
 0x786   : > { %1303 = vrsqrt.f32 %v730_v32  ;;  %1195 = vmatpush3.msra.mxu1 %v756_v33 }
 0x787   : > { %1196 = vmatprep.subr.mxu1 %v1462_v0 }
 0x788   : > { %1197 = vmatpush3.msra.mxu1 %v754_v30 }
 0x789   : > { %1198 = vmatprep.subr.mxu1 %v1462_v0  ;;  %v862_v36 = vpop.permute.xlu1 %861 }
 0x78a   : > { %1199 = vmatpush3.msra.mxu1 %v752_v34  ;;  %1206 = vmatpush3.msra.mxu0 %v862_v36 }
 0x78b   : > { %1207 = vmatprep.subr.mxu0 %v1462_v0 }
 0x78c   : > { %1208 = vmatpush3.msra.mxu0 %v860_v39 }
 0x78d   : > { %v858_v40 = vpop.permute.xlu1 %857  ;;  %1209 = vmatprep.subr.mxu0 %v1462_v0 }
 0x78e   : > { %1210 = vmatpush3.msra.mxu0 %v858_v40 }
 0x78f   : > { %1211 = vmatprep.subr.mxu0 %v1462_v0 }
 0x790   : > { %1212 = vmatpush3.msra.mxu0 %v856_v45 }
 0x791   : > { %v854_v46 = vpop.permute.xlu1 %853  ;;  %1213 = vmatprep.subr.mxu0 %v1462_v0 }
 0x792   : > { %1214 = vmatpush3.msra.mxu0 %v854_v46 }
 0x793   : > { %v1304_v42 = vpop.eup %1303  ;;  %1215 = vmatprep.subr.mxu0 %v1462_v0 }
 0x794   : > { %v732_v43 = vmul.f32 %v1304_v42, %v724_v22  ;;  %1216 = vmatpush3.msra.mxu0 %v852_v49 }
 0x795   : > { %v850_v50 = vpop.permute.xlu1 %849  ;;  %1217 = vmatprep.subr.mxu0 %v1462_v0 }
 0x796   : > { %v737_v47 = vmul.f32 %v736_v41, %v732_v43  ;;  %1218 = vmatpush3.msra.mxu0 %v850_v50 }
 0x798   : > { %v742_v48 = vadd.f32 %v741_v44, %v737_v47 }
 0x79a   : > { %1201 = vmatmul.mubr.msk.f32.vlgmr.msra.gmra.mxu1 %vm239_vm1, %v742_v48 }
 0x85a   : > { %v832_v53 = vpop.f32.mrf.mxu1 }
 0x85b   : > { %v833_v54 = vadd.f32 %v832_v53, %v746_v52 }
 0x85c   : > { %v1202_v55 = vpop.f32.mrf.mxu1 }
 0x85d   : > { %v836_v56 = vmax.f32 %v833_v54, 0.0 }
 0x85f   : > { %1220 = vmatmul.mubr.msk.f32.vlgmr.msra.gmra.mxu0 %vm873_vm5, %v836_v56 }
 0x91f   : > { %v943_v59 = vpop.f32.mrf.mxu0 }
 0x920   : > { %v944_v60 = vadd.f32 %v943_v59, %v840_v58 }
 0x921   : > { %v1221_v61 = vpop.f32.mrf.mxu0 }
 0x922   : > { %v947_v62 = vadd.f32 %v944_v60, %v742_v48 }
 0x924   : > { %v948_v0 = vsel %vm239_vm1, %v947_v62, 0.0 }
 0x925   : > { %949 = vadd.xlane.f32.xlu0 %v948_v0 }
 0x9ae   : > { %v950_v63 = vpop.xlane.xlu0 %949 }
 0x9af   : > { %v951_v1 = vmul.f32 0.03125, %v950_v63 }
 0x9b1   : > { %v952_v2 = vsub.f32 %v947_v62, %v951_v1 }
 0x9b3   : > { %v953_v3 = vmul.f32 %v952_v2, %v952_v2 }
 0x9b5   : > { %v954_v4 = vsel %vm239_vm1, %v953_v3, 0.0 }
 0x9b6   : > { %955 = vadd.xlane.f32.xlu1 %v954_v4 }
 0xa3f   : > { %v956_v6 = vpop.xlane.xlu1 %955 }
 0xa40   : > { %v957_v8 = vmul.f32 0.03125, %v956_v6 }
 0xa42   : > { %v958_v10 = vadd.f32 1e-05, %v957_v8 }
 0xa44   : > { %1305 = vrsqrt.f32 %v958_v10 }
 0xa51   : > { %v1306_v14 = vpop.eup %1305 }
 0xa52   : > { %v960_v15 = vmul.f32 %v1306_v14, %v952_v2 }
 0xa54   : > { %v965_v17 = vmul.f32 %v964_v13, %v960_v15 }
 0xa56   : > { %v970_v18 = vadd.f32 %v969_v16, %v965_v17 }
 0xa58   : > { %971 = vst.msk [vmem:[%s212_s6] sm:$0xff] %vm239_vm1, %v970_v18 }
 0xa59   : > { %1400 = shalt.err (!%p1397_p9)
}
 0xa5a   : > { %s1401_s4 = scalar_lea.hbm %s984_s17, 128  ;;  %s1405_s20 = scalar_lea.hbm %s1787_s3, 256 }
 0xa5b   : > { %p1402_p13 = scmp.ne.s32.totalorder %s984_s17, %s1401_s4  ;;  %p1406_p4 = scmp.lt.s32.totalorder %s984_s17, %s1787_s3 }
 0xa5c   : > { %p1407_p8 = scmp.lt.s32.totalorder %s1405_s20, %s1401_s4 }
 0xa5d   : > { %p1403_p5 = pnand %p1402_p13, %p1803_p0 }
 0xa5e   : > { %p1408_p3 = por %p1407_p8, %p1406_p4 }
 0xa5f   : > { %p1404_p10 = pneg %p1403_p5 }
 0xa61   : > { %p1409_p11 = pnand %p1408_p3, %p1404_p10 }
 0xa63   : > { %1412 = shalt.err (!%p1409_p11)
}
 0xa64   : > { %1232 = dma.vmem_to_hbm [thread:$0]  (%p1803_p0), %s987_s8, 128, %s984_s17, %s973_s22  }
 0xa65 PF: > { %s998_s28 = sand.u32 1, %s1443_s12   ;;  %p1804_p1 = scmp.ne.s32.totalorder %s1793_s19, 0 }
 0xa66   : > { %p1805_p2 = scmp.ge.s32.totalorder %s1455_s15, 2  ;;  %s999_s29 = scalar_lea.sflag [#allocation4], %s998_s28 }
 0xa68   : > { %p1246_p6 = pnand %p1805_p2, %p1804_p1 }
 0xa6a   : > { %p1247_p12 = pneg %p1246_p6 }
 0xa6c   : > { %1438 = dma.done.wait (%p1247_p12), %s999_s29, 128  }
 0xa6d   : > { %1440 = vsyncadd (%p1247_p12), %s999_s29, 4294967168  ;;  %p17_p7 = scmp.ge.s32.totalorder %s1563_s7, 4   ;;  %s1806_s12 = smov %s1447_s13 }
 0xa6e   : > { %s1807_s13 = smov %s1451_s14  ;;  %s1808_s14 = smov %s1579_s11 }
 0xa6f   : > { %s1809_s15 = smov %s1563_s7  ;;  %19 = sbr.rel (!%p17_p7) target bundleno = 6 (0x6), region = 85 }
 0xa74   :  { %1004 = vsyncpa [#allocation3], 1 }
 0xa75   :  { %1006 = vsyncpa [#allocation3 + $0x1], 1 }
 0xa76   :  { %1007 = vsyncpa [#allocation6], 1 }
 0xa77   :  { %1008 = vsyncpa [#allocation4], 1 }
 0xa78   :  { %1010 = vsyncpa [#allocation4 + $0x1], 1 }

</bundles_post_ra>
